<compile_context>
chip_gen: v6e
topology: v6e:2x2x1
jax: 0.10.0
libtpu: 0.0.40
codegen_flags: <defaults>
</compile_context>

<pallas_src>
import functools

import jax
import jax.numpy as jnp
from jax.experimental import pallas as pl
from jax.experimental.pallas import tpu as pltpu


def _round_up(x, m):
    return ((x + m - 1) // m) * m


def _pad2d(a, rows, cols, dtype):
    """Zero-pad a 2-D array to (rows, cols) in `dtype`; no-op copy avoided when aligned."""
    a = a.astype(dtype)
    r, c = a.shape
    if r == rows and c == cols:
        return a
    return jnp.zeros((rows, cols), dtype).at[:r, :c].set(a)


def _sigmoid(y):
    # exp -> EUP; divide -> EUP approx reciprocal (keeps the VALU free).
    return pl.reciprocal(1.0 + jnp.exp(-y), approx=True)


def dnn_kernel(x_ref, w1_ref, b1_ref, w2_ref, b2_ref, o_ref):
    # Fused: x @ W1 + b1 -> sigmoid -> @ W2 + b2 -> sigmoid, all VMEM-resident.
    x = x_ref[...]                                                     # [TB, Ip]
    h = jnp.dot(x, w1_ref[...], preferred_element_type=jnp.float32)   # MXU, f32 acc
    h = _sigmoid(h + b1_ref[...])                                      # bias bcast once/tile
    h = h.astype(w2_ref.dtype)                                         # (no-op for f32)
    y = jnp.dot(h, w2_ref[...], preferred_element_type=jnp.float32)   # MXU, f32 acc
    o_ref[...] = _sigmoid(y + b2_ref[...]).astype(o_ref.dtype)         # lane-dense store


def _pick_batch_tile(batch, in_p, hid_p, out_p, block_batch, itemsize,
                     vmem_budget_bytes):
    """Largest 8-aligned batch tile <= block_batch whose working set fits VMEM."""
    weights_bytes = (in_p * hid_p + hid_p * out_p) * itemsize + (hid_p + out_p) * 4
    tb = _round_up(min(block_batch, _round_up(batch, 8)), 8)
    while tb > 8:
        # 2x double-buffered x + out tiles, plus f32 hidden/output intermediates.
        per_tile = tb * (2 * in_p * itemsize + 2 * out_p * 4 + (hid_p + out_p) * 4)
        if weights_bytes + per_tile <= vmem_budget_bytes:
            break
        tb -= 8
    return tb


@functools.partial(
    jax.jit,
    static_argnames=("block_batch", "compute_dtype", "vmem_limit_bytes"))
def dnn_forward(x, w1, b1, w2, b2, *, block_batch=256,
                compute_dtype=jnp.float32, vmem_limit_bytes=None):
    """Fused forward of DNN: sigmoid(sigmoid(x @ w1 + b1) @ w2 + b2).

    x:  [batch, in]      w1: [in, hidden]   b1: [1, hidden]
    w2: [hidden, out]    b2: [1, out]       returns [batch, out] f32.
    """
    batch, in_size = x.shape
    hidden = w1.shape[1]
    out_size = w2.shape[1]
    f32 = jnp.float32
    itemsize = jnp.dtype(compute_dtype).itemsize

    # Lane-aligned padded dims (128 lanes) and sublane-aligned batch tile (8 rows).
    in_p = _round_up(in_size, 128)
    hid_p = _round_up(hidden, 128)
    out_p = _round_up(out_size, 128)
    # Conservative default budget (fits comfortably inside scoped VMEM on
    # v5e/v6e/v7x); raise vmem_limit_bytes + block_batch together for big configs.
    budget = vmem_limit_bytes if vmem_limit_bytes is not None else 24 << 20
    tb = _pick_batch_tile(batch, in_p, hid_p, out_p, block_batch, itemsize, budget)
    batch_p = _round_up(batch, tb)
    grid = (batch_p // tb,)

    xp = _pad2d(x, batch_p, in_p, compute_dtype)
    w1p = _pad2d(w1, in_p, hid_p, compute_dtype)
    b1p = _pad2d(b1, 1, hid_p, f32)
    w2p = _pad2d(w2, hid_p, out_p, compute_dtype)
    b2p = _pad2d(b2, 1, out_p, f32)

    out_padded = pl.pallas_call(
        dnn_kernel,
        out_shape=jax.ShapeDtypeStruct((batch_p, out_p), f32),
        grid=grid,
        in_specs=[
            pl.BlockSpec((tb, in_p), lambda i: (i, 0)),      # x streams over batch
            pl.BlockSpec((in_p, hid_p), lambda i: (0, 0)),   # W1 resident
            pl.BlockSpec((1, hid_p), lambda i: (0, 0)),      # b1 resident
            pl.BlockSpec((hid_p, out_p), lambda i: (0, 0)),  # W2 resident
            pl.BlockSpec((1, out_p), lambda i: (0, 0)),      # b2 resident
        ],
        out_specs=pl.BlockSpec((tb, out_p), lambda i: (i, 0)),
        compiler_params=pltpu.CompilerParams(
            dimension_semantics=("parallel",),               # 2 TCs on v7x
            vmem_limit_bytes=vmem_limit_bytes,
        ),
        cost_estimate=pl.CostEstimate(
            flops=2 * batch_p * (in_p * hid_p + hid_p * out_p),
            transcendentals=batch_p * (hid_p + out_p),
            bytes_accessed=(xp.size * itemsize + w1p.size * itemsize
                            + w2p.size * itemsize + (b1p.size + b2p.size) * 4
                            + batch_p * out_p * 4),
        ),
    )(xp, w1p, b1p, w2p, b2p)

    return out_padded[:batch, :out_size]


def init_params(key, input_size, hidden_units, output_size):
    """Deterministic init mimicking nn.Linear (uniform(-1/sqrt(fan_in), ...))."""
    k1, k2, k3, k4 = jax.random.split(key, 4)
    bound1 = 1.0 / jnp.sqrt(input_size)
    bound2 = 1.0 / jnp.sqrt(hidden_units)
    # Stored as [in, out] (transpose of PyTorch's [out, in]); equivalent math.
    w1 = jax.random.uniform(k1, (input_size, hidden_units), jnp.float32, -bound1, bound1)
    b1 = jax.random.uniform(k2, (1, hidden_units), jnp.float32, -bound1, bound1)
    w2 = jax.random.uniform(k3, (hidden_units, output_size), jnp.float32, -bound2, bound2)
    b2 = jax.random.uniform(k4, (1, output_size), jnp.float32, -bound2, bound2)
    return w1, b1, w2, b2


if __name__ == "__main__":
    # Small shapes consistent with the module: batch=8, input=32, hidden=64, output=16.
    batch, input_size, hidden_units, output_size = 8, 32, 64, 16

    key = jax.random.PRNGKey(0)
    kx, kp = jax.random.split(key)
    x = jax.random.normal(kx, (batch, input_size), dtype=jnp.float32)
    w1, b1, w2, b2 = init_params(kp, input_size, hidden_units, output_size)

    out = dnn_forward(x, w1, b1, w2, b2)
    out = jax.block_until_ready(out)

    # Reference in plain JAX (same math as the torch forward).
    ref = jax.nn.sigmoid(jax.nn.sigmoid(x @ w1 + b1) @ w2 + b2)
    assert out.shape == (batch, output_size)
    # Tolerance relaxed vs 1e-5 because of pl.reciprocal(approx=True) in sigmoid.
    assert jnp.allclose(out, ref, atol=2e-3, rtol=2e-3), float(jnp.max(jnp.abs(out - ref)))

    print("KERNEL_OK")
</pallas_src>

<mosaic_0001>
module attributes {stable_mosaic.version = 11 : i64} {
  func.func @dnn_kernel(%arg0: i32, %arg1: memref<8x128xf32, #tpu.memory_space<vmem>>, %arg2: memref<128x128xf32, #tpu.memory_space<vmem>>, %arg3: memref<1x128xf32, #tpu.memory_space<vmem>>, %arg4: memref<128x128xf32, #tpu.memory_space<vmem>>, %arg5: memref<1x128xf32, #tpu.memory_space<vmem>>, %arg6: memref<8x128xf32, #tpu.memory_space<vmem>>) attributes {dimension_semantics = [#tpu.dimension_semantics<parallel>], iteration_bounds = array<i64: 1>, scalar_prefetch = 0 : i64, scratch_operands = 0 : i64, tpu.core_type = #tpu.core_type<tc>, window_params = [{transform_indices = @transform_0, window_bounds = array<i64: 8, 128>}, {pipeline_mode = #tpu.pipeline_mode<synchronous>, transform_indices = @transform_1, window_bounds = array<i64: 128, 128>}, {pipeline_mode = #tpu.pipeline_mode<synchronous>, transform_indices = @transform_2, window_bounds = array<i64: 1, 128>}, {pipeline_mode = #tpu.pipeline_mode<synchronous>, transform_indices = @transform_3, window_bounds = array<i64: 128, 128>}, {pipeline_mode = #tpu.pipeline_mode<synchronous>, transform_indices = @transform_4, window_bounds = array<i64: 1, 128>}, {transform_indices = @transform_5, window_bounds = array<i64: 8, 128>}]} {
    %c0 = arith.constant 0 : index
    %c0_0 = arith.constant 0 : index
    %0 = vector.load %arg1[%c0, %c0_0] : memref<8x128xf32, #tpu.memory_space<vmem>>, vector<8x128xf32>
    %c0_1 = arith.constant 0 : index
    %c0_2 = arith.constant 0 : index
    %1 = vector.load %arg2[%c0_1, %c0_2] : memref<128x128xf32, #tpu.memory_space<vmem>>, vector<128x128xf32>
    %cst = arith.constant dense<0.000000e+00> : vector<8x128xf32>
    %2 = tpu.matmul %0, %1, %cst {dimension_numbers = #tpu.dot_dimension_numbers<[1], [0], [0], [1], [0, 0, 1, 1], [], []>} : vector<8x128xf32>, vector<128x128xf32>, vector<8x128xf32> -> vector<8x128xf32>
    %c0_3 = arith.constant 0 : index
    %c0_4 = arith.constant 0 : index
    %3 = vector.load %arg3[%c0_3, %c0_4] : memref<1x128xf32, #tpu.memory_space<vmem>>, vector<1x128xf32>
    %4 = vector.broadcast %3 : vector<1x128xf32> to vector<8x128xf32>
    %5 = arith.addf %2, %4 : vector<8x128xf32>
    %cst_5 = arith.constant 0.000000e+00 : f32
    %6 = vector.broadcast %cst_5 : f32 to vector<8x128xf32>
    %7 = arith.subf %6, %5 : vector<8x128xf32>
    %8 = math.exp %7 : vector<8x128xf32>
    %cst_6 = arith.constant 1.000000e+00 : f32
    %9 = vector.broadcast %cst_6 : f32 to vector<8x128xf32>
    %10 = arith.addf %9, %8 : vector<8x128xf32>
    %11 = tpu.reciprocal %10 {approx = true} : vector<8x128xf32> -> vector<8x128xf32>
    %c0_7 = arith.constant 0 : index
    %c0_8 = arith.constant 0 : index
    %12 = vector.load %arg4[%c0_7, %c0_8] : memref<128x128xf32, #tpu.memory_space<vmem>>, vector<128x128xf32>
    %cst_9 = arith.constant dense<0.000000e+00> : vector<8x128xf32>
    %13 = tpu.matmul %11, %12, %cst_9 {dimension_numbers = #tpu.dot_dimension_numbers<[1], [0], [0], [1], [0, 0, 1, 1], [], []>} : vector<8x128xf32>, vector<128x128xf32>, vector<8x128xf32> -> vector<8x128xf32>
    %c0_10 = arith.constant 0 : index
    %c0_11 = arith.constant 0 : index
    %14 = vector.load %arg5[%c0_10, %c0_11] : memref<1x128xf32, #tpu.memory_space<vmem>>, vector<1x128xf32>
    %15 = vector.broadcast %14 : vector<1x128xf32> to vector<8x128xf32>
    %16 = arith.addf %13, %15 : vector<8x128xf32>
    %cst_12 = arith.constant 0.000000e+00 : f32
    %17 = vector.broadcast %cst_12 : f32 to vector<8x128xf32>
    %18 = arith.subf %17, %16 : vector<8x128xf32>
    %19 = math.exp %18 : vector<8x128xf32>
    %cst_13 = arith.constant 1.000000e+00 : f32
    %20 = vector.broadcast %cst_13 : f32 to vector<8x128xf32>
    %21 = arith.addf %20, %19 : vector<8x128xf32>
    %22 = tpu.reciprocal %21 {approx = true} : vector<8x128xf32> -> vector<8x128xf32>
    %c0_14 = arith.constant 0 : index
    %c0_15 = arith.constant 0 : index
    %23 = vector.load %arg6[%c0_14, %c0_15] : memref<8x128xf32, #tpu.memory_space<vmem>>, vector<8x128xf32>
    tpu.vector_store %arg6[%c0_14, %c0_15], %22 {strides = array<i32>} : memref<8x128xf32, #tpu.memory_space<vmem>>, vector<8x128xf32>,
    return
  }
  func.func @transform_0(%arg0: i32) -> (i32, i32) {
    %c0_i32 = arith.constant 0 : i32
    %c0_i32_0 = arith.constant 0 : i32
    return %arg0, %c0_i32 : i32, i32
  }
  func.func @transform_1(%arg0: i32) -> (i32, i32) {
    %c0_i32 = arith.constant 0 : i32
    %c0_i32_0 = arith.constant 0 : i32
    %c0_i32_1 = arith.constant 0 : i32
    return %c0_i32, %c0_i32_0 : i32, i32
  }
  func.func @transform_2(%arg0: i32) -> (i32, i32) {
    %c0_i32 = arith.constant 0 : i32
    %c0_i32_0 = arith.constant 0 : i32
    %c0_i32_1 = arith.constant 0 : i32
    return %c0_i32, %c0_i32_0 : i32, i32
  }
  func.func @transform_3(%arg0: i32) -> (i32, i32) {
    %c0_i32 = arith.constant 0 : i32
    %c0_i32_0 = arith.constant 0 : i32
    %c0_i32_1 = arith.constant 0 : i32
    return %c0_i32, %c0_i32_0 : i32, i32
  }
  func.func @transform_4(%arg0: i32) -> (i32, i32) {
    %c0_i32 = arith.constant 0 : i32
    %c0_i32_0 = arith.constant 0 : i32
    %c0_i32_1 = arith.constant 0 : i32
    return %c0_i32, %c0_i32_0 : i32, i32
  }
  func.func @transform_5(%arg0: i32) -> (i32, i32) {
    %c0_i32 = arith.constant 0 : i32
    %c0_i32_0 = arith.constant 0 : i32
    return %arg0, %c0_i32 : i32, i32
  }
}

</mosaic_0001>

<bundles_post_ra>
// kernel: dnn_forward.1
= control target key start
LH: loop header
LB: loop body
LE: loop exit
PB: predicated region body
PF: predicated region fallthrough
CT: control target
= control target key end

     0   :  { %v372_v1 = vmov 0.0   ;;  %vm373_vm0 = vmmov 0   ;;  %s547_s0 = inlined_call_operand.vmem [shape: f32[8,128], index: 0, kind: input, shape index: {}]   ;;  %s548_s1 = inlined_call_operand.vmem [shape: f32[128,128], index: 1, kind: input, shape index: {}]   ;;  %s549_s2 = inlined_call_operand.vmem [shape: f32[1,128], index: 2, kind: input, shape index: {}]   ;;  %s550_s3 = inlined_call_operand.vmem [shape: f32[128,128], index: 3, kind: input, shape index: {}]   ;;  %s551_s4 = inlined_call_operand.vmem [shape: f32[1,128], index: 4, kind: input, shape index: {}]   ;;  %s552_s5 = inlined_call_operand.hbm [shape: f32[8,128], index: 5, kind: output, shape index: {}]  }
   0x1   :  { %v37_v0 = vld [vmem:[%s548_s1 + $0x78] sm:$0xff]  ;;  %269 = vmatprep.subr.mxu0 %v372_v1  ;;  %v36_v2 = vld [vmem:[%s548_s1 + $0x70] sm:$0xff]  ;;  %301 = vmatprep.mubr.msk.f32.mxu0 %vm373_vm0, %v372_v1  ;;  %v35_v3 = vld [vmem:[%s548_s1 + $0x68] sm:$0xff] }
   0x2   :  { %270 = vmatpush3.msra.mxu0 %v37_v0  ;;  %304 = vmatprep.subr.mxu1 %v372_v1  ;;  %v34_v4 = vld [vmem:[%s548_s1 + $0x60] sm:$0xff] }
   0x3   :  { %271 = vmatprep.subr.mxu0 %v372_v1  ;;  %336 = vmatprep.mubr.msk.f32.mxu1 %vm373_vm0, %v372_v1 }
   0x4   :  { %272 = vmatpush3.msra.mxu0 %v36_v2 }
   0x5   :  { %273 = vmatprep.subr.mxu0 %v372_v1 }
   0x6   :  { %274 = vmatpush3.msra.mxu0 %v35_v3 }
   0x7   :  { %10 = vsyncpa [#allocation3], 0  ;;  %275 = vmatprep.subr.mxu0 %v372_v1  ;;  %v33_v5 = vld [vmem:[%s548_s1 + $0x58] sm:$0xff]  ;;  %v32_v6 = vld [vmem:[%s548_s1 + $0x50] sm:$0xff] }
   0x8   :  { %276 = vmatpush3.msra.mxu0 %v34_v4  ;;  %v31_v7 = vld [vmem:[%s548_s1 + $0x48] sm:$0xff]  ;;  %v30_v8 = vld [vmem:[%s548_s1 + $0x40] sm:$0xff]  ;;  %v29_v9 = vld [vmem:[%s548_s1 + $0x38] sm:$0xff] }
   0x9   :  { %277 = vmatprep.subr.mxu0 %v372_v1  ;;  %v28_v10 = vld [vmem:[%s548_s1 + $0x30] sm:$0xff]  ;;  %v27_v11 = vld [vmem:[%s548_s1 + $0x28] sm:$0xff]  ;;  %v26_v12 = vld [vmem:[%s548_s1 + $0x20] sm:$0xff] }
   0xa   :  { %278 = vmatpush3.msra.mxu0 %v33_v5  ;;  %v25_v13 = vld [vmem:[%s548_s1 + $0x18] sm:$0xff]  ;;  %v24_v14 = vld [vmem:[%s548_s1 + $0x10] sm:$0xff]  ;;  %v23_v15 = vld [vmem:[%s548_s1 + $0x8] sm:$0xff] }
   0xb   :  { %279 = vmatprep.subr.mxu0 %v372_v1  ;;  %v22_v16 = vld [vmem:[%s548_s1] sm:$0xff]  ;;  %v135_v18 = vld [vmem:[%s550_s3 + $0x78] sm:$0xff]  ;;  %v134_v19 = vld [vmem:[%s550_s3 + $0x70] sm:$0xff] }
   0xc   :  { %280 = vmatpush3.msra.mxu0 %v32_v6  ;;  %v21_v17 = vld [vmem:[%s547_s0] sm:$0xff]  ;;  %305 = vmatpush3.msra.mxu1 %v135_v18  ;;  %v133_v20 = vld [vmem:[%s550_s3 + $0x68] sm:$0xff]  ;;  %v131_v22 = vld [vmem:[%s550_s3 + $0x58] sm:$0xff] }
   0xd   :  { %281 = vmatprep.subr.mxu0 %v372_v1  ;;  %306 = vmatprep.subr.mxu1 %v372_v1  ;;  %v132_v21 = vld [vmem:[%s550_s3 + $0x60] sm:$0xff]  ;;  %v130_v23 = vld [vmem:[%s550_s3 + $0x50] sm:$0xff]  ;;  %v129_v24 = vld [vmem:[%s550_s3 + $0x48] sm:$0xff] }
   0xe   :  { %282 = vmatpush3.msra.mxu0 %v31_v7  ;;  %307 = vmatpush3.msra.mxu1 %v134_v19  ;;  %v128_v25 = vld [vmem:[%s550_s3 + $0x40] sm:$0xff]  ;;  %v127_v26 = vld [vmem:[%s550_s3 + $0x38] sm:$0xff]  ;;  %v126_v27 = vld [vmem:[%s550_s3 + $0x30] sm:$0xff] }
   0xf   :  { %283 = vmatprep.subr.mxu0 %v372_v1  ;;  %308 = vmatprep.subr.mxu1 %v372_v1  ;;  %v125_v28 = vld [vmem:[%s550_s3 + $0x28] sm:$0xff]  ;;  %v124_v29 = vld [vmem:[%s550_s3 + $0x20] sm:$0xff]  ;;  %v123_v30 = vld [vmem:[%s550_s3 + $0x18] sm:$0xff] }
  0x10   :  { %284 = vmatpush3.msra.mxu0 %v30_v8  ;;  %309 = vmatpush3.msra.mxu1 %v133_v20  ;;  %v122_v31 = vld [vmem:[%s550_s3 + $0x10] sm:$0xff]  ;;  %v121_v32 = vld [vmem:[%s550_s3 + $0x8] sm:$0xff]  ;;  %v120_v33 = vld [vmem:[%s550_s3] sm:$0xff] }
  0x11   :  { %285 = vmatprep.subr.mxu0 %v372_v1  ;;  %310 = vmatprep.subr.mxu1 %v372_v1  ;;  %v233_v34 = vld [vmem:[%s549_s2] ss:$0 sm:$0xff]  ;;  %s374_s2 = smov [#allocation2]  }
  0x12   :  { %286 = vmatpush3.msra.mxu0 %v29_v9  ;;  %311 = vmatpush3.msra.mxu1 %v132_v21  ;;  %v234_v43 = vld [vmem:[%s551_s4] ss:$0 sm:$0xff]  ;;  %s225_s8 = sshll.u32 %s374_s2, 4  ;;  %s226_s8 = int_to_ptr.vmem [resolvable:$true] %s225_s8 }
  0x13   :  { %287 = vmatprep.subr.mxu0 %v372_v1  ;;  %312 = vmatprep.subr.mxu1 %v372_v1  ;;  %s350_s9 = scalar_lea.vmem %s226_s8, 128  ;;  %p355_p1 = scmp.lt.s32.totalorder %s226_s8, %s226_s8 }
  0x14   :  { %288 = vmatpush3.msra.mxu0 %v28_v10  ;;  %313 = vmatpush3.msra.mxu1 %v131_v22  ;;  %p351_p0 = scmp.ne.s32.totalorder %s226_s8, %s350_s9  ;;  %p356_p2 = scmp.lt.s32.totalorder %s350_s9, %s350_s9 }
  0x15   :  { %289 = vmatprep.subr.mxu0 %v372_v1  ;;  %314 = vmatprep.subr.mxu1 %v372_v1 }
  0x16   :  { %290 = vmatpush3.msra.mxu0 %v27_v11  ;;  %315 = vmatpush3.msra.mxu1 %v130_v23  ;;  %p357_p3 = por %p356_p2, %p355_p1 }
  0x17   :  { %291 = vmatprep.subr.mxu0 %v372_v1  ;;  %316 = vmatprep.subr.mxu1 %v372_v1 }
  0x18   :  { %292 = vmatpush3.msra.mxu0 %v26_v12  ;;  %317 = vmatpush3.msra.mxu1 %v129_v24  ;;  %p358_p4 = pnand %p357_p3, %p351_p0 }
  0x19   :  { %293 = vmatprep.subr.mxu0 %v372_v1  ;;  %318 = vmatprep.subr.mxu1 %v372_v1 }
  0x1a   :  { %294 = vmatpush3.msra.mxu0 %v25_v13  ;;  %319 = vmatpush3.msra.mxu1 %v128_v25 }
  0x1b   :  { %295 = vmatprep.subr.mxu0 %v372_v1  ;;  %320 = vmatprep.subr.mxu1 %v372_v1 }
  0x1c   :  { %296 = vmatpush3.msra.mxu0 %v24_v14  ;;  %321 = vmatpush3.msra.mxu1 %v127_v26 }
  0x1d   :  { %297 = vmatprep.subr.mxu0 %v372_v1  ;;  %322 = vmatprep.subr.mxu1 %v372_v1 }
  0x1e   :  { %298 = vmatpush3.msra.mxu0 %v23_v15  ;;  %323 = vmatpush3.msra.mxu1 %v126_v27 }
  0x1f   :  { %299 = vmatprep.subr.mxu0 %v372_v1  ;;  %324 = vmatprep.subr.mxu1 %v372_v1 }
  0x20   :  { %300 = vmatpush3.msra.mxu0 %v22_v16  ;;  %325 = vmatpush3.msra.mxu1 %v125_v28 }
  0x21   :  { %302 = vmatmul.mubr.f32.vlgmr.msra.gmra.mxu0 %v21_v17  ;;  %326 = vmatprep.subr.mxu1 %v372_v1 }
  0x22   :  { %327 = vmatpush3.msra.mxu1 %v124_v29 }
  0x23   :  { %328 = vmatprep.subr.mxu1 %v372_v1 }
  0x24   :  { %329 = vmatpush3.msra.mxu1 %v123_v30 }
  0x25   :  { %330 = vmatprep.subr.mxu1 %v372_v1 }
  0x26   :  { %331 = vmatpush3.msra.mxu1 %v122_v31 }
  0x27   :  { %332 = vmatprep.subr.mxu1 %v372_v1 }
  0x28   :  { %333 = vmatpush3.msra.mxu1 %v121_v32 }
  0x29   :  { %334 = vmatprep.subr.mxu1 %v372_v1 }
  0x2a   :  { %335 = vmatpush3.msra.mxu1 %v120_v33 }
  0xe1   :  { %v111_v35 = vpop.f32.mrf.mxu0 }
  0xe2   :  { %v112_v36 = vadd.f32 %v233_v34, %v111_v35 }
  0xe3   :  { %v303_v37 = vpop.f32.mrf.mxu0 }
  0xe4   :  { %v115_v38 = vsub.f32 0.0, %v112_v36 }
  0xe6   :  { %v116_v39 = vmul.f32 1.442695, %v115_v38 }
  0xe8   :  { %342 = vpow2.f32 %v116_v39 }
  0xf5   :  { %v343_v40 = vpop.eup %342 }
  0xf6   :  { %v118_v41 = vadd.f32 1.0, %v343_v40 }
  0xf8   :  { %344 = vrcp.f32 %v118_v41 }
 0x105   :  { %v345_v42 = vpop.eup %344 }
 0x106   :  { %337 = vmatmul.mubr.f32.vlgmr.msra.gmra.mxu1 %v345_v42 }
 0x1c6   :  { %v209_v44 = vpop.f32.mrf.mxu1 }
 0x1c7   :  { %v210_v45 = vadd.f32 %v234_v43, %v209_v44 }
 0x1c8   :  { %v338_v46 = vpop.f32.mrf.mxu1 }
 0x1c9   :  { %v213_v47 = vsub.f32 0.0, %v210_v45 }
 0x1cb   :  { %v214_v48 = vmul.f32 1.442695, %v213_v47 }
 0x1cd   :  { %346 = vpow2.f32 %v214_v48 }
 0x1da   :  { %v347_v49 = vpop.eup %346 }
 0x1db   :  { %v216_v50 = vadd.f32 1.0, %v347_v49 }
 0x1dd   :  { %348 = vrcp.f32 %v216_v50 }
 0x1ea   :  { %v349_v51 = vpop.eup %348 }
 0x1eb   :  { %218 = vst [vmem:[#allocation2] sm:$0xff] %v349_v51 }
 0x1ec   :  { %361 = shalt.err (!%p358_p4)
}
 0x1ed   :  { %228 = dma.vmem_to_hbm [thread:$0]  %s226_s8, 128, %s552_s5, [#allocation3]  }
 0x1ee   :  { %370 = dma.done.wait [#allocation3], 128  }
 0x1ef   :  { %371 = vsyncadd [#allocation3], 4294967168 }
 0x1f0   :  { %232 = vsyncpa [#allocation3], 1 }

</bundles_post_ra>
